<compile_context>
chip_gen: v6e
topology: v6e:2x2x1
jax: 0.10.0
libtpu: 0.0.40
codegen_flags: <defaults>
</compile_context>

<pallas_src>
import functools

import numpy as np
import jax
import jax.numpy as jnp
from jax.experimental import pallas as pl
from jax.experimental.pallas import tpu as pltpu


def conv2d_size_out(size, kernel_size=3, stride=2):
    return (size - kernel_size) // stride + 1


# ----------------------------------------------------------------------------
# Fused Pallas kernel: the ENTIRE DQN forward in one pallas_call.
# Activations stay in VMEM; only the padded (B, 128) Q slab is written to HBM.
# ----------------------------------------------------------------------------
def _dqn_fused_kernel(p1_ref, w1_ref, b1_ref,
                      w2_ref, b2_ref,
                      w3_ref, b3_ref,
                      wf1_ref, bf1_ref,
                      wf2_ref, bf2_ref,
                      q_ref,
                      *, tap_rows, batch, n_taps):
    f32 = jnp.float32
    bf16 = jnp.bfloat16

    # conv1 + ReLU: one wide-K matmul (bf16 MXU operands, f32 accumulate).
    a1 = jnp.dot(p1_ref[...], w1_ref[...], preferred_element_type=f32)
    a1 = jnp.maximum(a1 + b1_ref[...], 0.0)                     # f32 VPU epilogue

    # conv2 patch matrix: 9 contiguous tap row-blocks -> concatenated along K.
    p2 = jnp.concatenate(
        [a1[t * tap_rows:(t + 1) * tap_rows, :] for t in range(n_taps)], axis=-1)
    a2 = jnp.dot(p2.astype(bf16), w2_ref[...], preferred_element_type=f32)
    a2 = jnp.maximum(a2 + b2_ref[...], 0.0)

    # conv3 patch matrix: 9 contiguous spatial blocks (batch rows each) along K.
    p3 = jnp.concatenate(
        [a2[s * batch:(s + 1) * batch, :] for s in range(n_taps)], axis=-1)
    a3 = jnp.dot(p3.astype(bf16), w3_ref[...], preferred_element_type=f32)
    a3 = jnp.maximum(a3 + b3_ref[...], 0.0)

    # fc1 + ReLU (conv3 output is (B, c3) here; NCHW flatten == channel index).
    a4 = jnp.dot(a3.astype(bf16), wf1_ref[...], preferred_element_type=f32)
    a4 = jnp.maximum(a4 + bf1_ref[...], 0.0)

    # fc2 into a 128-lane padded slab (lane-dense store), bias add in f32.
    q = jnp.dot(a4.astype(bf16), wf2_ref[...], preferred_element_type=f32)
    q_ref[...] = q + bf2_ref[...]


# ----------------------------------------------------------------------------
# Forward pass (mirrors DQNAgent.forward) — one fused pallas_call, jitted
# ----------------------------------------------------------------------------
def _dqn_forward_impl(params, state_t, n_actions):
    """state_t: NCHW float [B, n_frames, H, W] -> Q-values [B, n_actions]."""
    x = state_t.astype(jnp.float32)
    B, Cin, H, W = x.shape
    x = jnp.transpose(x, (0, 2, 3, 1))                           # NHWC

    Ho1, Wo1 = conv2d_size_out(H), conv2d_size_out(W)
    Ho2, Wo2 = conv2d_size_out(Ho1), conv2d_size_out(Wo1)
    Ho3, Wo3 = conv2d_size_out(Ho2), conv2d_size_out(Wo2)

    c1 = params["conv1_w"].shape[0]          # 16
    c2 = params["conv2_w"].shape[0]          # 32
    c3 = params["conv3_w"].shape[0]          # 64
    nh = params["fc1_w"].shape[0]            # 256

    if not (Ho2 == 3 and Wo2 == 3 and Ho3 == 1 and Wo3 == 1):
        # TODO(synk): generalize the patch-regrouping to larger spatial grids
        # (84x84 replay frames) with an extra regroup stage + M-grid tiling.
        raise NotImplementedError("fused DQN kernel expects 16x16-class inputs "
                                  "(conv stack reduces to 3x3 -> 1x1).")
    assert n_actions <= 128

    # ---- layer-1 im2col over the full input (pure layout, under jit) --------
    cols = []
    for kh in range(3):
        for kw in range(3):
            cols.append(x[:, kh:kh + 2 * Ho1:2, kw:kw + 2 * Wo1:2, :])
    raster = jnp.concatenate(cols, axis=-1)                      # (B,Ho1,Wo1,9Cin)

    # Re-order (and where needed duplicate) conv1 patch rows tap-major so the
    # kernel can build conv2's patch matrix with contiguous slices + lane
    # concat only.  Row order: (conv2 tap, conv2 spatial pos, batch).
    S2 = Ho2 * Wo2
    blocks = []
    for kh2 in range(3):
        for kw2 in range(3):
            blk = raster[:, kh2:kh2 + 2 * Ho2:2, kw2:kw2 + 2 * Wo2:2, :]  # (B,Ho2,Wo2,9Cin)
            blk = jnp.transpose(blk, (1, 2, 0, 3)).reshape(S2 * B, 9 * Cin)
            blocks.append(blk)
    p1 = jnp.concatenate(blocks, axis=0)                         # (9*S2*B, 9*Cin)

    # ---- weights folded into matmul layouts (tiny transposes, under jit) ----
    bf16 = jnp.bfloat16
    w1m = jnp.transpose(params["conv1_w"], (2, 3, 1, 0)).reshape(9 * Cin, c1).astype(bf16)
    w2m = jnp.transpose(params["conv2_w"], (2, 3, 1, 0)).reshape(9 * c1, c2).astype(bf16)
    w3m = jnp.transpose(params["conv3_w"], (2, 3, 1, 0)).reshape(9 * c2, c3).astype(bf16)
    wf1 = jnp.transpose(params["fc1_w"], (1, 0)).astype(bf16)    # (c3, nh)  (S3 == 1)

    pad_n = 128                                                  # lane-dense fc2 output
    wf2 = jnp.transpose(params["fc2_w"], (1, 0))                 # (nh, A)
    wf2p = jnp.zeros((nh, pad_n), jnp.float32).at[:, :n_actions].set(wf2).astype(bf16)

    # Biases stay f32 (VPU epilogue in f32 on all generations, incl. v5e).
    b1 = params["conv1_b"].reshape(1, c1).astype(jnp.float32)
    b2 = params["conv2_b"].reshape(1, c2).astype(jnp.float32)
    b3 = params["conv3_b"].reshape(1, c3).astype(jnp.float32)
    bf1 = params["fc1_b"].reshape(1, nh).astype(jnp.float32)
    bf2p = jnp.zeros((1, pad_n), jnp.float32).at[:, :n_actions].set(
        params["fc2_b"][None, :])

    operands = (p1.astype(bf16), w1m, b1, w2m, b2, w3m, b3, wf1, bf1, wf2p, bf2p)

    # ---- cost estimate: real matmuls only (no selector flops/bytes) ---------
    def mm_flops(m, k, n):
        return 2 * m * k * n

    flops = (mm_flops(9 * S2 * B, 9 * Cin, c1)
             + mm_flops(S2 * B, 9 * c1, c2)
             + mm_flops(B, S2 * c2, c3)
             + mm_flops(B, c3, nh)
             + mm_flops(B, nh, pad_n))
    bytes_accessed = (sum(int(np.prod(op.shape)) * op.dtype.itemsize for op in operands)
                      + B * pad_n * 4)

    kernel = functools.partial(_dqn_fused_kernel,
                               tap_rows=S2 * B, batch=B, n_taps=9)

    q_pad = pl.pallas_call(
        kernel,
        out_shape=jax.ShapeDtypeStruct((B, pad_n), jnp.float32),
        cost_estimate=pl.CostEstimate(
            flops=flops, transcendentals=0, bytes_accessed=bytes_accessed),
        compiler_params=pltpu.CompilerParams(vmem_limit_bytes=32 * 1024 * 1024),
    )(*operands)

    q = q_pad[:, :n_actions]
    assert q.ndim == 2 and q.shape[0] == state_t.shape[0] and q.shape[1] == n_actions
    return q


dqn_forward = jax.jit(_dqn_forward_impl, static_argnums=2)


# ----------------------------------------------------------------------------
# Pure-XLA f32 reference (mirrors the PyTorch module) for a numerics check
# ----------------------------------------------------------------------------
@jax.jit
def dqn_forward_reference(params, state_t):
    x = state_t.astype(jnp.float32)

    def conv_relu(x, w, b):
        y = jax.lax.conv_general_dilated(
            x, w, window_strides=(2, 2), padding="VALID",
            dimension_numbers=("NCHW", "OIHW", "NCHW"))
        return jax.nn.relu(y + b[None, :, None, None])

    x = conv_relu(x, params["conv1_w"], params["conv1_b"])
    x = conv_relu(x, params["conv2_w"], params["conv2_b"])
    x = conv_relu(x, params["conv3_w"], params["conv3_b"])
    x = x.reshape(x.shape[0], -1)                    # NCHW flatten, like .view()
    x = jax.nn.relu(x @ params["fc1_w"].T + params["fc1_b"])
    return x @ params["fc2_w"].T + params["fc2_b"]


# ----------------------------------------------------------------------------
# Parameter init (deterministic, synthetic — PyTorch-native layouts)
# ----------------------------------------------------------------------------
def init_params(key, state_shape, n_actions):
    n_frames, w, h = state_shape
    keys = jax.random.split(key, 10)

    def rnd(k, shape, scale):
        return scale * jax.random.normal(k, shape, jnp.float32)

    cw, ch = w, h
    for _ in range(3):
        cw, ch = conv2d_size_out(cw), conv2d_size_out(ch)
    flat_dim = 64 * ch * cw

    return {
        "conv1_w": rnd(keys[0], (16, n_frames, 3, 3), 0.1),
        "conv1_b": rnd(keys[1], (16,), 0.1),
        "conv2_w": rnd(keys[2], (32, 16, 3, 3), 0.1),
        "conv2_b": rnd(keys[3], (32,), 0.1),
        "conv3_w": rnd(keys[4], (64, 32, 3, 3), 0.1),
        "conv3_b": rnd(keys[5], (64,), 0.1),
        "fc1_w": rnd(keys[6], (256, flat_dim), 0.05),
        "fc1_b": rnd(keys[7], (256,), 0.05),
        "fc2_w": rnd(keys[8], (n_actions, 256), 0.05),
        "fc2_b": rnd(keys[9], (n_actions,), 0.05),
    }


if __name__ == "__main__":
    state_shape = (4, 16, 16)    # (n_frames, w, h)
    n_actions = 6
    batch = 2

    key = jax.random.PRNGKey(0)
    pkey, xkey = jax.random.split(key)
    params = init_params(pkey, state_shape, n_actions)
    state_t = jax.random.normal(xkey, (batch,) + state_shape, jnp.float32)  # NCHW

    qvalues = dqn_forward(params, state_t, n_actions)
    jax.block_until_ready(qvalues)
    assert qvalues.shape == (batch, n_actions)

    q_ref = dqn_forward_reference(params, state_t)
    # bf16 MXU operands with f32 accumulation -> slightly relaxed tolerance.
    np.testing.assert_allclose(np.asarray(qvalues), np.asarray(q_ref),
                               rtol=2e-2, atol=2e-2)
    print("KERNEL_OK")
</pallas_src>

<mosaic_0001>
module attributes {stable_mosaic.version = 11 : i64} {
  func.func @_dqn_fused_kernel(%arg0: memref<162x36xbf16, #tpu.memory_space<vmem>>, %arg1: memref<36x16xbf16, #tpu.memory_space<vmem>>, %arg2: memref<1x16xf32, #tpu.memory_space<vmem>>, %arg3: memref<144x32xbf16, #tpu.memory_space<vmem>>, %arg4: memref<1x32xf32, #tpu.memory_space<vmem>>, %arg5: memref<288x64xbf16, #tpu.memory_space<vmem>>, %arg6: memref<1x64xf32, #tpu.memory_space<vmem>>, %arg7: memref<64x256xbf16, #tpu.memory_space<vmem>>, %arg8: memref<1x256xf32, #tpu.memory_space<vmem>>, %arg9: memref<256x128xbf16, #tpu.memory_space<vmem>>, %arg10: memref<1x128xf32, #tpu.memory_space<vmem>>, %arg11: memref<2x128xf32, #tpu.memory_space<vmem>>) attributes {dimension_semantics = [], scalar_prefetch = 0 : i64, scratch_operands = 0 : i64, tpu.core_type = #tpu.core_type<tc>} {
    %c0 = arith.constant 0 : index
    %c0_0 = arith.constant 0 : index
    %0 = vector.load %arg0[%c0, %c0_0] : memref<162x36xbf16, #tpu.memory_space<vmem>>, vector<162x36xbf16>
    %c0_1 = arith.constant 0 : index
    %c0_2 = arith.constant 0 : index
    %1 = vector.load %arg1[%c0_1, %c0_2] : memref<36x16xbf16, #tpu.memory_space<vmem>>, vector<36x16xbf16>
    %cst = arith.constant dense<0.000000e+00> : vector<162x16xf32>
    %2 = tpu.matmul %0, %1, %cst {dimension_numbers = #tpu.dot_dimension_numbers<[1], [0], [0], [1], [0, 0, 1, 1], [], []>} : vector<162x36xbf16>, vector<36x16xbf16>, vector<162x16xf32> -> vector<162x16xf32>
    %c0_3 = arith.constant 0 : index
    %c0_4 = arith.constant 0 : index
    %3 = vector.load %arg2[%c0_3, %c0_4] : memref<1x16xf32, #tpu.memory_space<vmem>>, vector<1x16xf32>
    %4 = vector.broadcast %3 : vector<1x16xf32> to vector<162x16xf32>
    %5 = arith.addf %2, %4 : vector<162x16xf32>
    %cst_5 = arith.constant 0.000000e+00 : f32
    %6 = vector.broadcast %cst_5 : f32 to vector<162x16xf32>
    %7 = arith.maximumf %5, %6 : vector<162x16xf32>
    %8 = vector.extract_strided_slice %7 {offsets = [0, 0], sizes = [18, 16], strides = [1, 1]} : vector<162x16xf32> to vector<18x16xf32>
    %9 = vector.extract_strided_slice %7 {offsets = [18, 0], sizes = [18, 16], strides = [1, 1]} : vector<162x16xf32> to vector<18x16xf32>
    %10 = vector.extract_strided_slice %7 {offsets = [36, 0], sizes = [18, 16], strides = [1, 1]} : vector<162x16xf32> to vector<18x16xf32>
    %11 = vector.extract_strided_slice %7 {offsets = [54, 0], sizes = [18, 16], strides = [1, 1]} : vector<162x16xf32> to vector<18x16xf32>
    %12 = vector.extract_strided_slice %7 {offsets = [72, 0], sizes = [18, 16], strides = [1, 1]} : vector<162x16xf32> to vector<18x16xf32>
    %13 = vector.extract_strided_slice %7 {offsets = [90, 0], sizes = [18, 16], strides = [1, 1]} : vector<162x16xf32> to vector<18x16xf32>
    %14 = vector.extract_strided_slice %7 {offsets = [108, 0], sizes = [18, 16], strides = [1, 1]} : vector<162x16xf32> to vector<18x16xf32>
    %15 = vector.extract_strided_slice %7 {offsets = [126, 0], sizes = [18, 16], strides = [1, 1]} : vector<162x16xf32> to vector<18x16xf32>
    %16 = vector.extract_strided_slice %7 {offsets = [144, 0], sizes = [18, 16], strides = [1, 1]} : vector<162x16xf32> to vector<18x16xf32>
    %17 = tpu.concatenate %8, %9, %10, %11, %12, %13, %14, %15, %16 in 1 : vector<18x16xf32>, vector<18x16xf32>, vector<18x16xf32>, vector<18x16xf32>, vector<18x16xf32>, vector<18x16xf32>, vector<18x16xf32>, vector<18x16xf32>, vector<18x16xf32> -> vector<18x144xf32>
    %18 = arith.truncf %17 : vector<18x144xf32> to vector<18x144xbf16>
    %c0_6 = arith.constant 0 : index
    %c0_7 = arith.constant 0 : index
    %19 = vector.load %arg3[%c0_6, %c0_7] : memref<144x32xbf16, #tpu.memory_space<vmem>>, vector<144x32xbf16>
    %cst_8 = arith.constant dense<0.000000e+00> : vector<18x32xf32>
    %20 = tpu.matmul %18, %19, %cst_8 {dimension_numbers = #tpu.dot_dimension_numbers<[1], [0], [0], [1], [0, 0, 1, 1], [], []>} : vector<18x144xbf16>, vector<144x32xbf16>, vector<18x32xf32> -> vector<18x32xf32>
    %c0_9 = arith.constant 0 : index
    %c0_10 = arith.constant 0 : index
    %21 = vector.load %arg4[%c0_9, %c0_10] : memref<1x32xf32, #tpu.memory_space<vmem>>, vector<1x32xf32>
    %22 = vector.broadcast %21 : vector<1x32xf32> to vector<18x32xf32>
    %23 = arith.addf %20, %22 : vector<18x32xf32>
    %cst_11 = arith.constant 0.000000e+00 : f32
    %24 = vector.broadcast %cst_11 : f32 to vector<18x32xf32>
    %25 = arith.maximumf %23, %24 : vector<18x32xf32>
    %26 = vector.extract_strided_slice %25 {offsets = [0, 0], sizes = [2, 32], strides = [1, 1]} : vector<18x32xf32> to vector<2x32xf32>
    %27 = vector.extract_strided_slice %25 {offsets = [2, 0], sizes = [2, 32], strides = [1, 1]} : vector<18x32xf32> to vector<2x32xf32>
    %28 = vector.extract_strided_slice %25 {offsets = [4, 0], sizes = [2, 32], strides = [1, 1]} : vector<18x32xf32> to vector<2x32xf32>
    %29 = vector.extract_strided_slice %25 {offsets = [6, 0], sizes = [2, 32], strides = [1, 1]} : vector<18x32xf32> to vector<2x32xf32>
    %30 = vector.extract_strided_slice %25 {offsets = [8, 0], sizes = [2, 32], strides = [1, 1]} : vector<18x32xf32> to vector<2x32xf32>
    %31 = vector.extract_strided_slice %25 {offsets = [10, 0], sizes = [2, 32], strides = [1, 1]} : vector<18x32xf32> to vector<2x32xf32>
    %32 = vector.extract_strided_slice %25 {offsets = [12, 0], sizes = [2, 32], strides = [1, 1]} : vector<18x32xf32> to vector<2x32xf32>
    %33 = vector.extract_strided_slice %25 {offsets = [14, 0], sizes = [2, 32], strides = [1, 1]} : vector<18x32xf32> to vector<2x32xf32>
    %34 = vector.extract_strided_slice %25 {offsets = [16, 0], sizes = [2, 32], strides = [1, 1]} : vector<18x32xf32> to vector<2x32xf32>
    %35 = tpu.concatenate %26, %27, %28, %29, %30, %31, %32, %33, %34 in 1 : vector<2x32xf32>, vector<2x32xf32>, vector<2x32xf32>, vector<2x32xf32>, vector<2x32xf32>, vector<2x32xf32>, vector<2x32xf32>, vector<2x32xf32>, vector<2x32xf32> -> vector<2x288xf32>
    %36 = arith.truncf %35 : vector<2x288xf32> to vector<2x288xbf16>
    %c0_12 = arith.constant 0 : index
    %c0_13 = arith.constant 0 : index
    %37 = vector.load %arg5[%c0_12, %c0_13] : memref<288x64xbf16, #tpu.memory_space<vmem>>, vector<288x64xbf16>
    %cst_14 = arith.constant dense<0.000000e+00> : vector<2x64xf32>
    %38 = tpu.matmul %36, %37, %cst_14 {dimension_numbers = #tpu.dot_dimension_numbers<[1], [0], [0], [1], [0, 0, 1, 1], [], []>} : vector<2x288xbf16>, vector<288x64xbf16>, vector<2x64xf32> -> vector<2x64xf32>
    %c0_15 = arith.constant 0 : index
    %c0_16 = arith.constant 0 : index
    %39 = vector.load %arg6[%c0_15, %c0_16] : memref<1x64xf32, #tpu.memory_space<vmem>>, vector<1x64xf32>
    %40 = vector.broadcast %39 : vector<1x64xf32> to vector<2x64xf32>
    %41 = arith.addf %38, %40 : vector<2x64xf32>
    %cst_17 = arith.constant 0.000000e+00 : f32
    %42 = vector.broadcast %cst_17 : f32 to vector<2x64xf32>
    %43 = arith.maximumf %41, %42 : vector<2x64xf32>
    %44 = arith.truncf %43 : vector<2x64xf32> to vector<2x64xbf16>
    %c0_18 = arith.constant 0 : index
    %c0_19 = arith.constant 0 : index
    %45 = vector.load %arg7[%c0_18, %c0_19] : memref<64x256xbf16, #tpu.memory_space<vmem>>, vector<64x256xbf16>
    %cst_20 = arith.constant dense<0.000000e+00> : vector<2x256xf32>
    %46 = tpu.matmul %44, %45, %cst_20 {dimension_numbers = #tpu.dot_dimension_numbers<[1], [0], [0], [1], [0, 0, 1, 1], [], []>} : vector<2x64xbf16>, vector<64x256xbf16>, vector<2x256xf32> -> vector<2x256xf32>
    %c0_21 = arith.constant 0 : index
    %c0_22 = arith.constant 0 : index
    %47 = vector.load %arg8[%c0_21, %c0_22] : memref<1x256xf32, #tpu.memory_space<vmem>>, vector<1x256xf32>
    %48 = vector.broadcast %47 : vector<1x256xf32> to vector<2x256xf32>
    %49 = arith.addf %46, %48 : vector<2x256xf32>
    %cst_23 = arith.constant 0.000000e+00 : f32
    %50 = vector.broadcast %cst_23 : f32 to vector<2x256xf32>
    %51 = arith.maximumf %49, %50 : vector<2x256xf32>
    %52 = arith.truncf %51 : vector<2x256xf32> to vector<2x256xbf16>
    %c0_24 = arith.constant 0 : index
    %c0_25 = arith.constant 0 : index
    %53 = vector.load %arg9[%c0_24, %c0_25] : memref<256x128xbf16, #tpu.memory_space<vmem>>, vector<256x128xbf16>
    %cst_26 = arith.constant dense<0.000000e+00> : vector<2x128xf32>
    %54 = tpu.matmul %52, %53, %cst_26 {dimension_numbers = #tpu.dot_dimension_numbers<[1], [0], [0], [1], [0, 0, 1, 1], [], []>} : vector<2x256xbf16>, vector<256x128xbf16>, vector<2x128xf32> -> vector<2x128xf32>
    %c0_27 = arith.constant 0 : index
    %c0_28 = arith.constant 0 : index
    %55 = vector.load %arg10[%c0_27, %c0_28] : memref<1x128xf32, #tpu.memory_space<vmem>>, vector<1x128xf32>
    %56 = vector.broadcast %55 : vector<1x128xf32> to vector<2x128xf32>
    %57 = arith.addf %54, %56 : vector<2x128xf32>
    %c0_29 = arith.constant 0 : index
    %c0_30 = arith.constant 0 : index
    %58 = vector.load %arg11[%c0_29, %c0_30] : memref<2x128xf32, #tpu.memory_space<vmem>>, vector<2x128xf32>
    tpu.vector_store %arg11[%c0_29, %c0_30], %57 {strides = array<i32>} : memref<2x128xf32, #tpu.memory_space<vmem>>, vector<2x128xf32>,
    return
  }
}

</mosaic_0001>

<bundles_post_ra>
// kernel: _dqn_forward_impl.1
= control target key start
LH: loop header
LB: loop body
LE: loop exit
PB: predicated region body
PF: predicated region fallthrough
CT: control target
= control target key end

     0   :  { %v1523_v1 = vmov 0.0   ;;  %vm175_vm0 = vcmask 1041408   ;;  %vm1524_vm1 = vmmov 0   ;;  %vm141_vm2 = vcmask 293888   ;;  %s1971_s0 = inlined_call_operand.vmem [shape: bf16[162,36], index: 0, kind: input, shape index: {}]   ;;  %s1972_s1 = inlined_call_operand.vmem [shape: bf16[36,16], index: 1, kind: input, shape index: {}]   ;;  %s1973_s2 = inlined_call_operand.vmem [shape: f32[1,16], index: 2, kind: input, shape index: {}]   ;;  %s1974_s3 = inlined_call_operand.vmem [shape: bf16[144,32], index: 3, kind: input, shape index: {}]   ;;  %s1975_s4 = inlined_call_operand.vmem [shape: f32[1,32], index: 4, kind: input, shape index: {}]   ;;  %s1976_s5 = inlined_call_operand.vmem [shape: bf16[288,64], index: 5, kind: input, shape index: {}]   ;;  %s1977_s6 = inlined_call_operand.vmem [shape: f32[1,64], index: 6, kind: input, shape index: {}]   ;;  %s1978_s7 = inlined_call_operand.vmem [shape: bf16[64,256], index: 7, kind: input, shape index: {}]   ;;  %s1979_s8 = inlined_call_operand.vmem [shape: f32[1,256], index: 8, kind: input, shape index: {}]   ;;  %s1980_s9 = inlined_call_operand.vmem [shape: bf16[256,128], index: 9, kind: input, shape index: {}]   ;;  %s1981_s10 = inlined_call_operand.vmem [shape: f32[1,128], index: 10, kind: input, shape index: {}]   ;;  %s1982_s11 = inlined_call_operand.hbm [shape: f32[2,128], index: 11, kind: output, shape index: {}]  }
   0x1   :  { %v1432_v0 = vld [vmem:[%s1972_s1 + $0x10] ss:$0 sps:$4 sm:$0x33]   ;;  %1313 = vmatprep.subr.bf16.mxu0 %v1523_v1  ;;  %v1433_v3 = vld [vmem:[%s1972_s1 + $0x8] sm:$0xff]   ;;  %1319 = vmatprep.mubr.msk.bf16.mxu0 %vm1524_vm1, %v1523_v1  ;;  %v1434_v4 = vld [vmem:[%s1972_s1] sm:$0xff]  }
   0x2   :  { %v177_v2 = vsel %vm175_vm0, %v1432_v0, 0  ;;  %v1435_v5 = vld [vmem:[%s1971_s0] sm:$0xff]   ;;  %v1436_v6 = vld [vmem:[%s1971_s0 + $0x8] sm:$0xff]   ;;  %v1437_v7 = vld [vmem:[%s1971_s0 + $0x10] sm:$0xff]  }
   0x3   :  { %1314 = vmatpush3.bf16.msra.mxu0 %v177_v2  ;;  %v1438_v8 = vld [vmem:[%s1971_s0 + $0x18] sm:$0xff]   ;;  %v1439_v9 = vld [vmem:[%s1971_s0 + $0x20] sm:$0xff]  }
   0x4   :  { %1315 = vmatprep.subr.bf16.mxu0 %v1523_v1 }
   0x7   :  { %1316 = vmatpush3.bf16.msra.mxu0 %v1433_v3 }
   0x8   :  { %1317 = vmatprep.subr.bf16.mxu0 %v1523_v1 }
   0xb   :  { %1318 = vmatpush3.bf16.msra.mxu0 %v1434_v4 }
   0xe   :  { %1320 = vmatmul.mubr.msk.bf16.vlgmr.msra.gmra.mxu0 %vm141_vm2, %v1435_v5 }
   0xf   :  { %1323 = vmatprep.mubr.msk.bf16.mxu0 %vm1524_vm1, %v1523_v1 }
  0x16   :  { %1324 = vmatmul.mubr.msk.bf16.gmra.mxu0 %vm141_vm2, %v1436_v6 }
  0x17   :  { %1327 = vmatprep.mubr.msk.bf16.mxu0 %vm1524_vm1, %v1523_v1 }
  0x1e   :  { %1328 = vmatmul.mubr.msk.bf16.gmra.mxu0 %vm141_vm2, %v1437_v7 }
  0x1f   :  { %1331 = vmatprep.mubr.msk.bf16.mxu0 %vm1524_vm1, %v1523_v1 }
  0x26   :  { %1332 = vmatmul.mubr.msk.bf16.gmra.mxu0 %vm141_vm2, %v1438_v8 }
  0x27   :  { %1335 = vmatprep.mubr.msk.bf16.mxu0 %vm1524_vm1, %v1523_v1 }
  0x28   :  { %16 = vsyncpa [#allocation3], 0  ;;  %v1440_v10 = vld [vmem:[%s1971_s0 + $0x28] sm:$0xff]   ;;  %v1441_v11 = vld [vmem:[%s1971_s0 + $0x30] sm:$0xff]   ;;  %vm323_vm3 = vcmask 1045504   ;;  %vm340_vm4 = vcmask 1043456  }
  0x29   :  { %v1442_v12 = vld [vmem:[%s1971_s0 + $0x38] sm:$0xff]   ;;  %v1443_v13 = vld [vmem:[%s1971_s0 + $0x40] sm:$0xff]   ;;  %v1444_v14 = vld [vmem:[%s1971_s0 + $0x48] sm:$0xff]   ;;  %s1526_s27 = smov 32   ;;  %v1527_v61 = vmov 0   ;;  %s1528_s13 = smov 48  }
  0x2a   :  { %v1445_v15 = vld [vmem:[%s1971_s0 + $0x50] ss:$0 sps:$4 sm:$0x11]   ;;  %v1680_v22 = vld [vmem:[%s1973_s2] ss:$0 sm:$0xff]  ;;  %s1525_s0 = smov 16   ;;  %548 = vmatprep.subr.bf16.mxu1 %v1527_v61 }
  0x2b   :  { %v1446_v59 = vld [vmem:[%s1974_s3 + $0x38] sm:$0xff]   ;;  %v1447_v0 = vld [vmem:[%s1974_s3 + $0x30] sm:$0xff]   ;;  %s1529_s16 = smov 64   ;;  %s1530_s25 = smov 80   ;;  %vm431_vm5 = vcmask 130048   ;;  %vm435_vm6 = vcmask 261120  }
  0x2c   :  { %549 = vmatpush1.bf16.msra.mxu1 %v1446_v59  ;;  %s1531_s1 = smov 96   ;;  %vm439_vm7 = vcmask 392192   ;;  %vm443_vm8 = vcmask 523264   ;;  %vm447_vm9 = vcmask 654336   ;;  %vm451_vm10 = vcmask 785408  }
  0x2d   :  { %550 = vmatprep.subr.bf16.mxu1 %v1527_v61  ;;  %vm455_vm11 = vcmask 916480  }
  0x2e   :  { %1336 = vmatmul.mubr.msk.bf16.gmra.mxu0 %vm141_vm2, %v1439_v9  ;;  %v1448_v9 = vld [vmem:[%s1974_s3 + $0x28] sm:$0xff]  }
  0x2f   :  { %1339 = vmatprep.mubr.msk.bf16.mxu0 %vm1524_vm1, %v1523_v1 }
  0x30   :  { %551 = vmatpush1.bf16.msra.mxu1 %v1447_v0 }
  0x31   :  { %552 = vmatprep.subr.bf16.mxu1 %v1527_v61 }
  0x34   :  { %553 = vmatpush1.bf16.msra.mxu1 %v1448_v9 }
  0x35   :  { %554 = vmatprep.subr.bf16.mxu1 %v1527_v61 }
  0x36   :  { %1340 = vmatmul.mubr.msk.bf16.gmra.mxu0 %vm141_vm2, %v1440_v10 }
  0x37   :  { %1343 = vmatprep.mubr.msk.bf16.mxu0 %vm1524_vm1, %v1523_v1 }
  0x3e   :  { %1344 = vmatmul.mubr.msk.bf16.gmra.mxu0 %vm141_vm2, %v1441_v11 }
  0x3f   :  { %1347 = vmatprep.mubr.msk.bf16.mxu0 %vm1524_vm1, %v1523_v1 }
  0x46   :  { %1348 = vmatmul.mubr.msk.bf16.gmra.mxu0 %vm141_vm2, %v1442_v12 }
  0x47   :  { %1351 = vmatprep.mubr.msk.bf16.mxu0 %vm1524_vm1, %v1523_v1 }
  0x4e   :  { %1352 = vmatmul.mubr.msk.bf16.gmra.mxu0 %vm141_vm2, %v1443_v13 }
  0x4f   :  { %1355 = vmatprep.mubr.msk.bf16.mxu0 %vm1524_vm1, %v1523_v1 }
  0x56   :  { %1356 = vmatmul.mubr.msk.bf16.gmra.mxu0 %vm141_vm2, %v1444_v14 }
  0x57   :  { %1359 = vmatprep.mubr.msk.bf16.mxu0 %vm1524_vm1, %v1523_v1 }
  0x5e   :  { %1360 = vmatmul.mubr.msk.bf16.gmra.mxu0 %vm141_vm2, %v1445_v15 }
  0xce   :  { %v1673_v16 = vpop.f32.mrf.mxu0 }
  0xd0   :  { %v1321_v17 = vpop.f32.mrf.mxu0 }
  0xd1   :  { %v1449_v17 = vld [vmem:[%s1974_s3 + $0x20] sm:$0xff]  }
  0xd2   :  { %v1675_v18 = vpop.f32.mrf.mxu0  ;;  %555 = vmatpush1.bf16.msra.mxu1 %v1449_v17 }
  0xd3   :  { %556 = vmatprep.subr.bf16.mxu1 %v1527_v61 }
  0xd4   :  { %v1322_v19 = vpop.f32.mrf.mxu0 }
  0xd6   :  { %v221_v20 = vpop.f32.mrf.mxu0 }
  0xd7   :  { %v1683_v24 = vadd.f32 %v1680_v22, %v221_v20 }
  0xd8   :  { %v1325_v21 = vpop.f32.mrf.mxu0 }
  0xd9   :  { %v301_v29 = vmax.f32 %v1683_v24, 0.0 }
  0xda   :  { %v224_v23 = vpop.f32.mrf.mxu0 }
  0xdb   :  { %v225_v25 = vadd.f32 %v1680_v22, %v224_v23  ;;  %v324_v35 = vrot.slane %v301_v29, 2 }
  0xdc   :  { %v1326_v26 = vpop.f32.mrf.mxu0 }
  0xdd   :  { %v302_v27 = vmax.f32 %v225_v25, 0.0 }
  0xde   :  { %v229_v28 = vpop.f32.mrf.mxu0 }
  0xdf   :  { %v230_v30 = vadd.f32 %v1680_v22, %v229_v28  ;;  %v325_v32 = vrot.slane %v302_v27, 2  ;;  %v1450_v27 = vld [vmem:[%s1974_s3 + $0x18] sm:$0xff]  }
  0xe0   :  { %v1329_v31 = vpop.f32.mrf.mxu0  ;;  %557 = vmatpush1.bf16.msra.mxu1 %v1450_v27 }
  0xe1   :  { %v303_v33 = vmax.f32 %v230_v30, 0.0  ;;  %v326_v40 = vsel %vm323_vm3, %v324_v35, %v325_v32  ;;  %v1451_v31 = vld [vmem:[%s1974_s3 + $0x10] sm:$0xff]   ;;  %558 = vmatprep.subr.bf16.mxu1 %v1527_v61 }
  0xe2   :  { %v232_v34 = vpop.f32.mrf.mxu0 }
  0xe3   :  { %v1690_v36 = vrot.slane %v303_v33, 2  ;;  %v233_v37 = vadd.f32 %v1680_v22, %v232_v34  ;;  %v341_v49 = vrot.slane %v303_v33, 4 }
  0xe4   :  { %v1330_v38 = vpop.f32.mrf.mxu0  ;;  %559 = vmatpush1.bf16.msra.mxu1 %v1451_v31 }
  0xe5   :  { %v304_v39 = vmax.f32 %v233_v37, 0.0  ;;  %v328_v41 = vsel %vm323_vm3, %v325_v32, %v1690_v36  ;;  %560 = vmatprep.subr.bf16.mxu1 %v1527_v61 }
  0xe6   :  { %v237_v42 = vpop.f32.mrf.mxu0  ;;  %v1382_v43 = vpack.i.bf16 %v328_v41, %v326_v40 }
  0xe7   :  { %v238_v44 = vadd.f32 %v1680_v22, %v237_v42  ;;  %v342_v46 = vrot.slane %v304_v39, 4 }
  0xe8   :  { %1383 = vrot.lane.b32.xlu0 %v1382_v43, %s1525_s0  ;;  %v1333_v45 = vpop.f32.mrf.mxu0  ;;  %v1452_v43 = vld [vmem:[%s1974_s3 + $0x8] sm:$0xff]  }
  0xe9   :  { %v305_v47 = vmax.f32 %v238_v44, 0.0  ;;  %v343_v54 = vsel %vm340_vm4, %v341_v49, %v342_v46  ;;  %561 = vmatpush1.bf16.msra.mxu1 %v1452_v43 }
  0xea   :  { %v240_v48 = vpop.f32.mrf.mxu0  ;;  %562 = vmatprep.subr.bf16.mxu1 %v1527_v61 }
  0xeb   :  { %v1698_v50 = vrot.slane %v305_v47, 4  ;;  %v241_v51 = vadd.f32 %v1680_v22, %v240_v48  ;;  %v357_v3 = vrot.slane %v305_v47, 6 }
  0xec   :  { %v1334_v52 = vpop.f32.mrf.mxu0 }
  0xed   :  { %v306_v53 = vmax.f32 %v241_v51, 0.0  ;;  %v345_v55 = vsel %vm340_vm4, %v342_v46, %v1698_v50  ;;  %v1453_v52 = vld [vmem:[%s1974_s3] sm:$0xff]  }
  0xee   :  { %v245_v56 = vpop.f32.mrf.mxu0  ;;  %v1387_v57 = vpack.i.bf16 %v345_v55, %v343_v54  ;;  %563 = vmatpush1.bf16.msra.mxu1 %v1453_v52 }
  0xef   :  { %v246_v58 = vadd.f32 %v1680_v22, %v245_v56  ;;  %v358_v62 = vrot.slane %v306_v53, 6  ;;  %578 = vmatprep.subr.bf16.mxu1 %v1527_v61 }
  0xf0   :  { %1388 = vrot.lane.b32.xlu0 %v1387_v57, %s1526_s27  ;;  %v1337_v60 = vpop.f32.mrf.mxu0 }
  0xf1   :  { %v307_v63 = vmax.f32 %v246_v58, 0.0  ;;  %v359_v7 = vsel %vm175_vm0, %v357_v3, %v358_v62  ;;  %v1454_v60 = vld [vmem:[%s1974_s3 + $0x40] sm:$0xff]   ;;  %s1532_s3 = smov 112  }
  0xf2   :  { %v248_v2 = vpop.f32.mrf.mxu0  ;;  %579 = vmatpush2.bf16.msra.mxu1 %v1454_v60 }
  0xf3   :  { %v1714_v4 = vrot.slane %v307_v63, 6  ;;  %v249_v6 = vadd.f32 %v1680_v22, %v248_v2 }
  0xf4   :  { %v1338_v5 = vpop.f32.mrf.mxu0 }
  0xf5   :  { %v361_v8 = vsel %vm175_vm0, %v358_v62, %v1714_v4  ;;  %v308_v14 = vmax.f32 %v249_v6, 0.0 }
  0xf6   :  { %v253_v10 = vpop.f32.mrf.mxu0  ;;  %v1392_v11 = vpack.i.bf16 %v361_v8, %v359_v7 }
  0xf7   :  { %v254_v12 = vadd.f32 %v1680_v22, %v253_v10 }
  0xf8   :  { %1393 = vrot.lane.b32.xlu1 %v1392_v11, %s1528_s13  ;;  %v1341_v13 = vpop.f32.mrf.mxu0 }
  0xf9   :  { %v309_v15 = vmax.f32 %v254_v12, 0.0 }
  0xfa   :  { %v256_v19 = vpop.f32.mrf.mxu0 }
  0xfb   :  { %v1397_v20 = vpack.i.bf16 %v309_v15, %v308_v14  ;;  %v1733_v25 = vadd.f32 %v1680_v22, %v256_v19 }
  0xfc   :  { %v1342_v21 = vpop.f32.mrf.mxu0 }
  0xfd   :  { %1398 = vrot.lane.b32.xlu1 %v1397_v20, %s1529_s16  ;;  %v310_v33 = vmax.f32 %v1733_v25, 0.0 }
  0xfe   :  { %v261_v23 = vpop.f32.mrf.mxu0 }
  0xff   :  { %v262_v26 = vadd.f32 %v1680_v22, %v261_v23  ;;  %v385_v40 = vrot.slane %v310_v33, 2 }
 0x100   :  { %v1345_v28 = vpop.f32.mrf.mxu0 }
 0x101   :  { %v311_v30 = vmax.f32 %v262_v26, 0.0 }
 0x102   :  { %v264_v32 = vpop.f32.mrf.mxu0 }
 0x103   :  { %v265_v34 = vadd.f32 %v1680_v22, %v264_v32  ;;  %v386_v37 = vrot.slane %v311_v30, 2 }
 0x104   :  { %v1346_v35 = vpop.f32.mrf.mxu0 }
 0x105   :  { %v312_v38 = vmax.f32 %v265_v34, 0.0  ;;  %v387_v46 = vsel %vm323_vm3, %v385_v40, %v386_v37 }
 0x106   :  { %v269_v39 = vpop.f32.mrf.mxu0 }
 0x107   :  { %v388_v41 = vrot.slane %v312_v38, 2  ;;  %v270_v42 = vadd.f32 %v1680_v22, %v269_v39  ;;  %v401_v57 = vrot.slane %v312_v38, 4 }
 0x108   :  { %v1349_v44 = vpop.f32.mrf.mxu0 }
 0x109   :  { %v313_v45 = vmax.f32 %v270_v42, 0.0  ;;  %v389_v47 = vsel %vm323_vm3, %v386_v37, %v388_v41  ;;  %v214_v37 = vadd.f32 %v1680_v22, %v1673_v16 }
 0x10a   :  { %v272_v48 = vpop.f32.mrf.mxu0  ;;  %v1402_v49 = vpack.i.bf16 %v389_v47, %v387_v46 }
 0x10b   :  { %v273_v51 = vadd.f32 %v1680_v22, %v272_v48  ;;  %v402_v54 = vrot.slane %v313_v45, 4  ;;  %v299_v40 = vmax.f32 %v214_v37, 0.0  ;;  %v1462_v37 = vld [vmem:[%s1976_s5 + $0x20] sm:$0xff]  }
 0x10c   :  { %1403 = vrot.lane.b32.xlu0 %v1402_v49, %s1530_s25  ;;  %v1350_v53 = vpop.f32.mrf.mxu0 }
 0x10d   :  { %v314_v55 = vmax.f32 %v273_v51, 0.0  ;;  %v403_v0 = vsel %vm340_vm4, %v401_v57, %v402_v54 }
 0x10e   :  { %v277_v56 = vpop.f32.mrf.mxu0 }
 0x10f   :  { %v404_v58 = vrot.slane %v314_v55, 4  ;;  %v278_v59 = vadd.f32 %v1680_v22, %v277_v56  ;;  %v417_v11 = vrot.slane %v314_v55, 6 }
 0x110   :  { %v1353_v62 = vpop.f32.mrf.mxu0 }
 0x111   :  { %v315_v63 = vmax.f32 %v278_v59, 0.0  ;;  %v405_v2 = vsel %vm340_vm4, %v402_v54, %v404_v58 }
 0x112   :  { %v280_v3 = vpop.f32.mrf.mxu0  ;;  %v1407_v5 = vpack.i.bf16 %v405_v2, %v403_v0 }
 0x113   :  { %v281_v6 = vadd.f32 %v1680_v22, %v280_v3  ;;  %v418_v8 = vrot.slane %v315_v63, 6 }
 0x114   :  { %1408 = vrot.lane.b32.xlu1 %v1407_v5, %s1531_s1  ;;  %v1354_v7 = vpop.f32.mrf.mxu0 }
 0x115   :  { %v316_v9 = vmax.f32 %v281_v6, 0.0  ;;  %v419_v15 = vsel %vm175_vm0, %v417_v11, %v418_v8 }
 0x116   :  { %v285_v10 = vpop.f32.mrf.mxu0 }
 0x117   :  { %v420_v12 = vrot.slane %v316_v9, 6  ;;  %v286_v13 = vadd.f32 %v1680_v22, %v285_v10 }
 0x118   :  { %333 = vrot.lane.b32.xlu1 %v1690_v36, %s1525_s0  ;;  %v1357_v14 = vpop.f32.mrf.mxu0 }
 0x119   :  { %v421_v17 = vsel %vm175_vm0, %v418_v8, %v420_v12  ;;  %v317_v21 = vmax.f32 %v286_v13, 0.0 }
 0x11a   :  { %v1412_v19 = vpack.i.bf16 %v421_v17, %v419_v15  ;;  %v288_v20 = vpop.f32.mrf.mxu0 }
 0x11b   :  { %v289_v23 = vadd.f32 %v1680_v22, %v288_v20 }
 0x11c   :  { %366 = vrot.lane.b32.xlu1 %v1714_v4, %s1528_s13  ;;  %1413 = vrot.lane.b32.xlu0 %v1412_v19, %s1532_s3  ;;  %v1358_v26 = vpop.f32.mrf.mxu0 }
 0x11d   :  { %v318_v27 = vmax.f32 %v289_v23, 0.0 }
 0x11e   :  { %v293_v28 = vpop.f32.mrf.mxu0 }
 0x11f   :  { %v460_v30 = vpack.c.bf16 %v318_v27, %v317_v21  ;;  %v294_v47 = vadd.f32 %v1680_v22, %v293_v28 }
 0x120   :  { %394 = vrot.lane.b32.xlu1 %v388_v41, %s1530_s25  ;;  %350 = vrot.lane.b32.xlu0 %v1698_v50, %s1526_s27  ;;  %v1361_v36 = vpop.f32.mrf.mxu0  ;;  %v217_v50 = vadd.f32 %v1680_v22, %v1675_v18 }
 0x121   :  { %1204 = vmatprep.mubr.msk.bf16.mxu1 %vm431_vm5, %v460_v30  ;;  %v319_v59 = vmax.f32 %v294_v47, 0.0  ;;  %v1455_v30 = vld [vmem:[%s1976_s5 + $0x78] sm:$0xff]  }
 0x122   :  { %v296_v31 = vpop.f32.mrf.mxu0  ;;  %v300_v43 = vmax.f32 %v217_v50, 0.0  ;;  %v1456_v36 = vld [vmem:[%s1976_s5 + $0x38] sm:$0xff]   ;;  %1266 = vmatprep.subr.bf16.mxu1 %v1455_v30  ;;  %v1476_v30 = vld [vmem:[%s1978_s7 + $0x20] ss:$8 sps:$4 sm:$0xff]  }
 0x123   :  { %v462_v11 = vpack.c.bf16 %v319_v59, %v319_v59  ;;  %v1457_v31 = vld [vmem:[%s1976_s5 + $0x70] sm:$0xff]   ;;  %v1463_v50 = vld [vmem:[%s1976_s5 + $0x58] sm:$0xff]  }
 0x124   :  { %426 = vrot.lane.b32.xlu1 %v420_v12, %s1532_s3  ;;  %378 = vrot.lane.b32.xlu0 %v310_v33, %s1529_s16  ;;  %v1362_v4 = vpop.f32.mrf.mxu0 }
 0x125   :  { %v1458_v4 = vld [vmem:[%s1976_s5 + $0x30] sm:$0xff]  }
 0x128   :  { %410 = vrot.lane.b32.xlu0 %v404_v58, %s1531_s1 }
 0x15a   :  { %v1384_v34 = vpop.permute.xlu0 %1383 }
 0x15b   :  { %v1386_v41 = vunpack.i.h.bf16 %v1384_v34  ;;  %v1385_v42 = vunpack.i.l.bf16 %v1384_v34  ;;  %v1460_v34 = vld [vmem:[%s1976_s5 + $0x28] sm:$0xff]  }
 0x15d   :  { %v432_v52 = vsel %vm431_vm5, %v299_v40, %v1385_v42  ;;  %v433_v53 = vsel %vm431_vm5, %v300_v43, %v1386_v41  ;;  %v1466_v40 = vld [vmem:[%s1976_s5 + $0x10] sm:$0xff]   ;;  %v1194_v41 = vld [vmem:[%s1975_s4] ss:$0 sm:$0xff]  ;;  %v1467_v43 = vld [vmem:[%s1976_s5 + $0x48] sm:$0xff]  }
 0x162   :  { %v1389_v38 = vpop.permute.xlu0 %1388 }
 0x163   :  { %v1391_v25 = vunpack.i.h.bf16 %v1389_v38  ;;  %v1390_v33 = vunpack.i.l.bf16 %v1389_v38  ;;  %v1464_v38 = vld [vmem:[%s1976_s5 + $0x18] sm:$0xff]  }
 0x165   :  { %v436_v56 = vsel %vm435_vm6, %v432_v52, %v1390_v33  ;;  %v437_v57 = vsel %vm435_vm6, %v433_v53, %v1391_v25  ;;  %v1468_v33 = vld [vmem:[%s1976_s5 + $0x8] sm:$0xff]  }
 0x16a   :  { %v1394_v32 = vpop.permute.xlu1 %1393 }
 0x16b   :  { %v1396_v45 = vunpack.i.h.bf16 %v1394_v32  ;;  %v1395_v46 = vunpack.i.l.bf16 %v1394_v32  ;;  %v1459_v32 = vld [vmem:[%s1976_s5 + $0x68] sm:$0xff]  }
 0x16d   :  { %v440_v58 = vsel %vm439_vm7, %v436_v56, %v1395_v46  ;;  %v441_v22 = vsel %vm439_vm7, %v437_v57, %v1396_v45  ;;  %v1469_v46 = vld [vmem:[%s1976_s5 + $0x40] sm:$0xff]  }
 0x16f   :  { %v1399_v35 = vpop.permute.xlu1 %1398 }
 0x170   :  { %v1401_v48 = vunpack.i.h.bf16 %v1399_v35  ;;  %v1400_v16 = vunpack.i.l.bf16 %v1399_v35  ;;  %v1461_v35 = vld [vmem:[%s1976_s5 + $0x60] sm:$0xff]  }
 0x172   :  { %v444_v62 = vsel %vm443_vm8, %v440_v58, %v1400_v16  ;;  %v445_v63 = vsel %vm443_vm8, %v441_v22, %v1401_v48  ;;  %v1470_v16 = vld [vmem:[%s1976_s5] sm:$0xff]  }
 0x17e   :  { %v1404_v44 = vpop.permute.xlu0 %1403 }
 0x17f   :  { %v1406_v18 = vunpack.i.h.bf16 %v1404_v44  ;;  %v1405_v51 = vunpack.i.l.bf16 %v1404_v44 }
 0x181   :  { %v448_v5 = vsel %vm447_vm9, %v444_v62, %v1405_v51  ;;  %v449_v6 = vsel %vm447_vm9, %v445_v63, %v1406_v18 }
 0x186   :  { %v1409_v39 = vpop.permute.xlu1 %1408 }
 0x187   :  { %v1411_v54 = vunpack.i.h.bf16 %v1409_v39  ;;  %v1410_v55 = vunpack.i.l.bf16 %v1409_v39  ;;  %v1465_v39 = vld [vmem:[%s1976_s5 + $0x50] sm:$0xff]  }
 0x189   :  { %v452_v7 = vsel %vm451_vm10, %v448_v5, %v1410_v55  ;;  %v453_v8 = vsel %vm451_vm10, %v449_v6, %v1411_v54 }
 0x18a   :  { %v334_v49 = vpop.permute.xlu1 %333 }
 0x18b   :  { %v434_v12 = vsel %vm431_vm5, %v301_v29, %v334_v49 }
 0x18e   :  { %v1414_v60 = vpop.permute.xlu0 %1413  ;;  %v367_v0 = vpop.permute.xlu1 %366 }
 0x18f   :  { %v1416_v2 = vunpack.i.h.bf16 %v1414_v60  ;;  %v1415_v3 = vunpack.i.l.bf16 %v1414_v60 }
 0x191   :  { %v456_v9 = vsel %vm455_vm11, %v452_v7, %v1415_v3  ;;  %v457_v10 = vsel %vm455_vm11, %v453_v8, %v1416_v2 }
 0x192   :  { %v351_v13 = vpop.permute.xlu0 %350  ;;  %v459_v14 = vpack.c.bf16 %v457_v10, %v456_v9  ;;  %v395_v17 = vpop.permute.xlu1 %394 }
 0x193   :  { %v438_v15 = vsel %vm435_vm6, %v434_v12, %v351_v13 }
 0x194   :  { %581 = vmatmul.mubr.bf16.vlgmr.msra.gmra.mxu1 %v459_v14  ;;  %v442_v19 = vsel %vm439_vm7, %v438_v15, %v367_v0 }
 0x195   :  { %1205 = vmatprep.mubr.msk.bf16.mxu1 %vm431_vm5, %v462_v11  ;;  %1267 = vmatpush3.bf16.msra.mxu1 %v1456_v36  ;;  %v1481_v36 = vld [vmem:[%s1978_s7 + $0x14] ss:$8 sps:$4 sm:$0xff]  }
 0x196   :  { %v379_v20 = vpop.permute.xlu0 %378  ;;  %v427_v27 = vpop.permute.xlu1 %426  ;;  %1268 = vmatprep.subr.bf16.mxu1 %v1457_v31  ;;  %v1479_v31 = vld [vmem:[%s1978_s7 + $0x10] ss:$8 sps:$4 sm:$0xff]  }
 0x197   :  { %v446_v21 = vsel %vm443_vm8, %v442_v19, %v379_v20 }
 0x198   :  { %v450_v23 = vsel %vm447_vm9, %v446_v21, %v395_v17 }
 0x199   :  { %1269 = vmatpush3.bf16.msra.mxu1 %v1458_v4  ;;  %v1482_v4 = vld [vmem:[%s1978_s7] ss:$8 sps:$4 sm:$0xff]  }
 0x19a   :  { %v411_v26 = vpop.permute.xlu0 %410  ;;  %1270 = vmatprep.subr.bf16.mxu1 %v1459_v32  ;;  %v1485_v32 = vld [vmem:[%s1980_s9 + $0x78] sm:$0xff]  }
 0x19b   :  { %v454_v24 = vsel %vm451_vm10, %v450_v23, %v411_v26  ;;  %v1471_v23 = vld [vmem:[%s1976_s5 + $0x88] sm:$0xff]   ;;  %v1472_v26 = vld [vmem:[%s1976_s5 + $0x80] sm:$0xff]   ;;  %1291 = vmatprep.subr.bf16.mxu0 %v1485_v32 }
 0x19c   :  { %v458_v29 = vsel %vm455_vm11, %v454_v24, %v427_v27  ;;  %v1475_v24 = vld [vmem:[%s1978_s7 + $0x34] ss:$8 sps:$4 sm:$0xff]  }
 0x19d   :  { %v461_v28 = vpack.c.bf16 %v458_v29, %v458_v29  ;;  %1271 = vmatpush3.bf16.msra.mxu1 %v1460_v34  ;;  %v1473_v29 = vld [vmem:[%s1978_s7 + $0x30] ss:$8 sps:$4 sm:$0xff]  }
 0x19e   :  { %1272 = vmatprep.subr.bf16.mxu1 %v1461_v35  ;;  %v1486_v34 = vld [vmem:[%s1980_s9 + $0x38] sm:$0xff]   ;;  %v1487_v35 = vld [vmem:[%s1980_s9 + $0x70] sm:$0xff]  }
 0x19f   :  { %589 = vmatmul.mubr.bf16.gmra.mxu1 %v461_v28  ;;  %1292 = vmatpush3.bf16.msra.mxu0 %v1486_v34 }
 0x1a0   :  { %1293 = vmatprep.subr.bf16.mxu0 %v1487_v35 }
 0x1a1   :  { %1273 = vmatpush3.bf16.msra.mxu1 %v1462_v37  ;;  %v1488_v37 = vld [vmem:[%s1980_s9 + $0x30] sm:$0xff]  }
 0x1a2   :  { %1274 = vmatprep.subr.bf16.mxu1 %v1463_v50  ;;  %v1489_v50 = vld [vmem:[%s1980_s9 + $0x68] sm:$0xff]  }
 0x1a3   :  { %1294 = vmatpush3.bf16.msra.mxu0 %v1488_v37 }
 0x1a4   :  { %1295 = vmatprep.subr.bf16.mxu0 %v1489_v50 }
 0x1a5   :  { %1275 = vmatpush3.bf16.msra.mxu1 %v1464_v38  ;;  %v1490_v38 = vld [vmem:[%s1980_s9 + $0x28] sm:$0xff]  }
 0x1a6   :  { %1276 = vmatprep.subr.bf16.mxu1 %v1465_v39  ;;  %v1491_v39 = vld [vmem:[%s1980_s9 + $0x60] sm:$0xff]  }
 0x1a7   :  { %1296 = vmatpush3.bf16.msra.mxu0 %v1490_v38 }
 0x1a8   :  { %1297 = vmatprep.subr.bf16.mxu0 %v1491_v39 }
 0x1a9   :  { %1277 = vmatpush3.bf16.msra.mxu1 %v1466_v40  ;;  %v1492_v40 = vld [vmem:[%s1980_s9 + $0x20] sm:$0xff]  }
 0x1aa   :  { %1278 = vmatprep.subr.bf16.mxu1 %v1467_v43  ;;  %v1495_v43 = vld [vmem:[%s1980_s9 + $0x50] sm:$0xff]  }
 0x1ab   :  { %1298 = vmatpush3.bf16.msra.mxu0 %v1492_v40 }
 0x1ad   :  { %1279 = vmatpush3.bf16.msra.mxu1 %v1468_v33  ;;  %v1497_v33 = vld [vmem:[%s1980_s9 + $0x48] sm:$0xff]  }
 0x1ae   :  { %1280 = vmatprep.subr.bf16.mxu1 %v1469_v46  ;;  %v1500_v46 = vld [vmem:[%s1980_s9] sm:$0xff]  }
 0x1b1   :  { %1281 = vmatpush3.bf16.msra.mxu1 %v1470_v16 }
 0x1b2   :  { %1363 = vmatprep.subr.bf16.mxu1 %v1523_v1 }
 0x254   :  { %v582_v42 = vpop.f32.mrf.mxu1 }
 0x255   :  { %v583_v25 = vadd.f32 %v1194_v41, %v582_v42  ;;  %v1494_v42 = vld [vmem:[%s1980_s9 + $0x18] sm:$0xff]  }
 0x256   :  { %v584_v44 = vpop.f32.mrf.mxu1 }
 0x257   :  { %v596_v47 = vmax.f32 %v583_v25, 0.0  ;;  %v1496_v25 = vld [vmem:[%s1980_s9 + $0x10] sm:$0xff]   ;;  %v1498_v44 = vld [vmem:[%s1980_s9 + $0x8] sm:$0xff]  }
 0x258   :  { %v585_v45 = vpop.f32.mrf.mxu1 }
 0x259   :  { %v586_v48 = vadd.f32 %v1194_v41, %v585_v45  ;;  %v604_v51 = vrot.slane %v596_v47, 4  ;;  %v600_v53 = vrot.slane %v596_v47, 2  ;;  %v608_v60 = vrot.slane %v596_v47, 6  ;;  %v1499_v45 = vld [vmem:[%s1980_s9 + $0x40] sm:$0xff]  }
 0x25a   :  { %v587_v49 = vpop.f32.mrf.mxu1 }
 0x25b   :  { %v597_v18 = vmax.f32 %v586_v48, 0.0 }
 0x25d   :  { %v617_v52 = vrot.slane %v597_v18, 4  ;;  %v613_v54 = vrot.slane %v597_v18, 2  ;;  %v621_v58 = vrot.slane %v597_v18, 6 }
 0x25f   :  { %v590_v55 = vpop.f32.mrf.mxu1  ;;  %v1422_v56 = vpack.i.bf16 %v604_v51, %v617_v52  ;;  %v1417_v57 = vpack.i.bf16 %v600_v53, %v613_v54  ;;  %v1427_v63 = vpack.i.bf16 %v608_v60, %v621_v58 }
 0x260   :  { %v591_v22 = vadd.f32 %v1194_v41, %v590_v55  ;;  %v1493_v41 = vld [vmem:[%s1980_s9 + $0x58] sm:$0xff]  }
 0x261   :  { %1423 = vrot.lane.b32.xlu1 %v1422_v56, %s1529_s16  ;;  %1418 = vrot.lane.b32.xlu0 %v1417_v57, %s1526_s27  ;;  %v592_v59 = vpop.f32.mrf.mxu1 }
 0x262   :  { %v598_v27 = vmax.f32 %v591_v22, 0.0  ;;  %1299 = vmatprep.subr.bf16.mxu0 %v1493_v41  ;;  %v880_v59 = vlaneseq }
 0x263   :  { %v593_v62 = vpop.f32.mrf.mxu1  ;;  %1300 = vmatpush3.bf16.msra.mxu0 %v1494_v42 }
 0x264   :  { %v633_v28 = vpack.c.bf16 %v598_v27, %v598_v27  ;;  %1301 = vmatprep.subr.bf16.mxu0 %v1495_v43  ;;  %v881_v60 = vshrl.u32 %v880_v59, 7 }
 0x265   :  { %1428 = vrot.lane.b32.xlu0 %v1427_v63, %s1531_s1  ;;  %v594_v0 = vpop.f32.mrf.mxu1  ;;  %v878_v63 = vld [vmem:[%s1979_s8] sm:$0x3]  ;;  %s1533_s8 = smov [#allocation2]  }
 0x266   :  { %v882_v62 = vsub.s32 0, %v881_v60  ;;  %v886_v0 = vsub.s32 1, %v881_v60  ;;  %s1160_s23 = sshll.u32 %s1533_s8, 4  ;;  %s1161_s23 = int_to_ptr.vmem [resolvable:$true] %s1160_s23 }
 0x267   :  { %1302 = vmatpush3.bf16.msra.mxu0 %v1496_v25  ;;  %s1501_s24 = scalar_lea.vmem %s1161_s23, 32  ;;  %p1506_p1 = scmp.lt.s32.totalorder %s1161_s23, %s1161_s23 }
 0x268   :  { %1303 = vmatprep.subr.bf16.mxu0 %v1497_v33  ;;  %p1502_p0 = scmp.ne.s32.totalorder %s1161_s23, %s1501_s24  ;;  %p1507_p2 = scmp.lt.s32.totalorder %s1501_s24, %s1501_s24 }
 0x26a   :  { %p1508_p3 = por %p1507_p2, %p1506_p1 }
 0x26b   :  { %1304 = vmatpush3.bf16.msra.mxu0 %v1498_v44 }
 0x26c   :  { %1305 = vmatprep.subr.bf16.mxu0 %v1499_v45  ;;  %p1509_p4 = pnand %p1508_p3, %p1502_p0 }
 0x26f   :  { %1306 = vmatpush3.bf16.msra.mxu0 %v1500_v46 }
 0x2d3   :  { %v1424_v2 = vpop.permute.xlu1 %1423  ;;  %v1419_v3 = vpop.permute.xlu0 %1418 }
 0x2d4   :  { %v1421_v5 = vunpack.i.h.bf16 %v1419_v3  ;;  %v1420_v6 = vunpack.i.l.bf16 %v1419_v3  ;;  %v1426_v7 = vunpack.i.h.bf16 %v1424_v2  ;;  %v1425_v8 = vunpack.i.l.bf16 %v1424_v2 }
 0x2d5   :  { %v883_v2 = vrot.slane %v878_v63, %v882_v62  ;;  %v887_v3 = vrot.slane %v878_v63, %v886_v0 }
 0x2d6   :  { %v625_v9 = vsel %vm435_vm6, %v596_v47, %v1421_v5  ;;  %v628_v10 = vsel %vm435_vm6, %v597_v18, %v1420_v6  ;;  %v1206_v18 = vld [vmem:[%s1977_s6] ss:$0 sm:$0xff] }
 0x2d7   :  { %v1429_v11 = vpop.permute.xlu0 %1428  ;;  %v626_v14 = vsel %vm443_vm8, %v625_v9, %v1426_v7  ;;  %v629_v15 = vsel %vm443_vm8, %v628_v10, %v1425_v8 }
 0x2d8   :  { %v1431_v12 = vunpack.i.h.bf16 %v1429_v11  ;;  %v1430_v13 = vunpack.i.l.bf16 %v1429_v11 }
 0x2da   :  { %v627_v17 = vsel %vm451_vm10, %v626_v14, %v1431_v12  ;;  %v630_v19 = vsel %vm451_vm10, %v629_v15, %v1430_v13 }
 0x2db   :  { %v631_v20 = vpack.c.bf16 %v627_v17, %v627_v17  ;;  %v632_v21 = vpack.c.bf16 %v630_v19, %v630_v19  ;;  %v1235_v19 = vld [vmem:[%s1981_s10] ss:$0 sm:$0xff] }
 0x2dd   :  { %820 = vmatprep.mubr.bf16.mxu1 %v632_v21 }
 0x2de   :  { %821 = vmatmul.mubr.bf16.vlgmr.msra.gmra.mxu1 %v631_v20 }
 0x2df   :  { %1364 = vmatpush3.bf16.msra.mxu1 %v1471_v23  ;;  %1367 = vmatprep.mubr.msk.bf16.mxu1 %vm1524_vm1, %v1523_v1 }
 0x2e0   :  { %1365 = vmatprep.subr.bf16.mxu1 %v1523_v1  ;;  %v1478_v1 = vld [vmem:[%s1978_s7 + $0x24] ss:$8 sps:$4 sm:$0xff]  }
 0x2e3   :  { %1366 = vmatpush3.bf16.msra.mxu1 %v1472_v26 }
 0x2e4   :  { %941 = vmatprep.subr.bf16.mxu1 %v1475_v24 }
 0x2e6   :  { %1368 = vmatmul.mubr.msk.bf16.vlgmr.msra.gmra.mxu1 %vm435_vm6, %v633_v28 }
 0x2e7   :  { %942 = vmatpush1.bf16.msra.mxu1 %v1473_v29  ;;  %965 = vmatprep.mubr.bf16.mxu1 %v1527_v61  ;;  %v1484_v61 = vld [vmem:[%s1978_s7 + $0x4] ss:$8 sps:$4 sm:$0xff]  }
 0x2e8   :  { %943 = vmatprep.subr.bf16.mxu1 %v1478_v1 }
 0x2eb   :  { %944 = vmatpush1.bf16.msra.mxu1 %v1476_v30 }
 0x2ec   :  { %945 = vmatprep.subr.bf16.mxu1 %v1481_v36 }
 0x2ef   :  { %946 = vmatpush1.bf16.msra.mxu1 %v1479_v31 }
 0x2f0   :  { %947 = vmatprep.subr.bf16.mxu1 %v1484_v61 }
 0x2f3   :  { %948 = vmatpush1.bf16.msra.mxu1 %v1482_v4 }
 0x39e   :  { %v1282_v47 = vpop.f32.mrf.mxu1 }
 0x3a0   :  { %v1283_v48 = vpop.f32.mrf.mxu1 }
 0x3a1   :  { %v1284_v16 = vadd.f32 %v1283_v48, %v1282_v47 }
 0x3a2   :  { %v1285_v49 = vpop.f32.mrf.mxu1 }
 0x3a3   :  { %v823_v52 = vadd.f32 %v1284_v16, %v1206_v18 }
 0x3a4   :  { %v1286_v51 = vpop.f32.mrf.mxu1 }
 0x3a6   :  { %v862_v53 = vpop.f32.mrf.mxu1 }
 0x3a7   :  { %v863_v54 = vadd.f32 %v862_v53, %v823_v52 }
 0x3a8   :  { %v1369_v55 = vpop.f32.mrf.mxu1 }
 0x3a9   :  { %v868_v56 = vmax.f32 %v863_v54, 0.0 }
 0x3aa   :  { %v865_v57 = vpop.f32.mrf.mxu1 }
 0x3ab   :  { %v869_v58 = vpack.c.bf16 %v868_v56, %v868_v56 }
 0x3ac   :  { %v1370_v22 = vpop.f32.mrf.mxu1 }
 0x3ad   :  { %1234 = vmatmul.mubr.msk.bf16.vlgmr.msra.gmra.mxu1 %vm443_vm8, %v869_v58 }
 0x46d   :  { %v967_v5 = vpop.f32.mrf.mxu1 }
 0x46e   :  { %v968_v6 = vadd.f32 %v967_v5, %v883_v2 }
 0x46f   :  { %v969_v7 = vpop.f32.mrf.mxu1 }
 0x470   :  { %v970_v8 = vadd.f32 %v969_v7, %v887_v3  ;;  %v974_v9 = vmax.f32 %v968_v6, 0.0 }
 0x471   :  { %v971_v10 = vpop.f32.mrf.mxu1 }
 0x472   :  { %v975_v11 = vmax.f32 %v970_v8, 0.0  ;;  %v976_v14 = vpack.c.bf16 %v974_v9, %v974_v9 }
 0x473   :  { %v972_v12 = vpop.f32.mrf.mxu1 }
 0x474   :  { %v977_v13 = vpack.c.bf16 %v975_v11, %v975_v11 }
 0x476   :  { %1145 = vmatprep.mubr.bf16.mxu0 %v977_v13 }
 0x477   :  { %1146 = vmatmul.mubr.bf16.vlgmr.msra.gmra.mxu0 %v976_v14 }
 0x537   :  { %v1307_v15 = vpop.f32.mrf.mxu0 }
 0x539   :  { %v1308_v17 = vpop.f32.mrf.mxu0 }
 0x53a   :  { %v1309_v20 = vadd.f32 %v1308_v17, %v1307_v15 }
 0x53b   :  { %v1310_v21 = vpop.f32.mrf.mxu0 }
 0x53c   :  { %v1148_v23 = vadd.f32 %v1309_v20, %v1235_v19 }
 0x53d   :  { %v1311_v26 = vpop.f32.mrf.mxu0 }
 0x53e   :  { %1153 = vst [vmem:[#allocation2] sm:$0x3] %v1148_v23 }
 0x53f   :  { %1512 = shalt.err (!%p1509_p4)
}
 0x540   :  { %1163 = dma.vmem_to_hbm [thread:$0]  %s1161_s23, 32, %s1982_s11, [#allocation3]  }
 0x541   :  { %1521 = dma.done.wait [#allocation3], 32  }
 0x542   :  { %1522 = vsyncadd [#allocation3], 4294967264 }
 0x543   :  { %1167 = vsyncpa [#allocation3], 1 }

</bundles_post_ra>
